<compile_context>
chip_gen: v7x
topology: tpu7x:2x2x1
jax: 0.10.0
libtpu: 0.0.40
codegen_flags: <defaults>
</compile_context>

<pallas_src>
import math
import numpy as np
import jax
import jax.numpy as jnp
from jax.experimental import pallas as pl
from jax.experimental.pallas import tpu as pltpu


# ----------------------------- fused Pallas kernel -----------------------------

def _fused_gcn_kernel(x_ref, w1_ref, b1_ref,
                      adj1_ref, norm1_ref, adj2_ref, norm2_ref,
                      alf_ref, arf_ref, seg_ref, expd_ref,
                      w2_ref, b2_ref, o_ref):
    # (1) h = linear(x)                                               (N, HD), f32
    h = jnp.dot(x_ref[...], w1_ref[...],
                preferred_element_type=jnp.float32) + b1_ref[...]

    # (2) both symmetric-normalized graph aggregations in one pass over h.
    #     o_g = norm * (A_g @ (norm * h));  A is 0/1 bf16, (norm*h) cast to bf16 for
    #     the MXU, accumulation in f32.
    n1 = norm1_ref[...]
    n2 = norm2_ref[...]
    hn1 = (h * n1).astype(jnp.bfloat16)
    hn2 = (h * n2).astype(jnp.bfloat16)
    h1 = n1 * jnp.dot(adj1_ref[...], hn1, preferred_element_type=jnp.float32)
    h2 = n2 * jnp.dot(adj2_ref[...], hn2, preferred_element_type=jnp.float32)

    # (3) attention logits for the raw-reshape head groups, lane-dense.
    #     AL_full/AR_full hold the per-(row, lane-block) head parameters; Seg sums each
    #     hid-wide lane block -> (N, H) on the MXU (no per-head XLU reductions / grid loop).
    seg = seg_ref[...]
    ai = jnp.dot(h * alf_ref[...], seg, preferred_element_type=jnp.float32)
    aj1 = jnp.dot(h1 * arf_ref[...], seg, preferred_element_type=jnp.float32)
    aj2 = jnp.dot(h2 * arf_ref[...], seg, preferred_element_type=jnp.float32)

    def lrelu(v):
        return jnp.where(v > 0, v, 0.2 * v)

    a1 = jnp.clip(jnp.exp(lrelu(ai + aj1)), -10.0, 10.0)
    a2 = jnp.clip(jnp.exp(lrelu(ai + aj2)), -10.0, 10.0)
    inv_s = pl.reciprocal(a1 + a2, approx=True)        # EUP vrcp, off the VALU slot
    alpha1 = a1 * inv_s                                # (N, H); alpha2 = 1 - alpha1

    # broadcast per-group alpha back onto lanes with a 0/1 expand matmul (MXU),
    # then combine:  hc = alpha1*h1 + alpha2*h2 = h2 + alpha1*(h1 - h2)
    alpha1_b = jnp.dot(alpha1, expd_ref[...], preferred_element_type=jnp.float32)
    hc = h2 + alpha1_b * (h1 - h2)

    # (4) output projection
    o_ref[...] = jnp.dot(hc, w2_ref[...],
                         preferred_element_type=jnp.float32) + b2_ref[...]


_VMEM = pl.BlockSpec(memory_space=pltpu.MemorySpace.VMEM)


def gcn_layer_forward(x, prep):
    """Single fused pallas_call for the whole GCNLayer forward (eval mode)."""
    n = x.shape[0]
    out_feats = prep["w2_t"].shape[1]
    return pl.pallas_call(
        _fused_gcn_kernel,
        out_shape=jax.ShapeDtypeStruct((n, out_feats), jnp.float32),
        in_specs=[_VMEM] * 13,
        out_specs=_VMEM,
    )(x, prep["w1_t"], prep["b1"],
      prep["adj1"], prep["norm1"], prep["adj2"], prep["norm2"],
      prep["al_full"], prep["ar_full"], prep["seg"], prep["expand"],
      prep["w2_t"], prep["b2"])


# ----------------------------- host-side parameter prep (one-time glue) -----------------------------

def prepare_inputs(params, adj1, norm1, adj2, norm2, num_heads, hid_feats, n):
    """Pre-transpose / pre-pack parameters and graph data for the fused kernel."""
    hd = num_heads * hid_feats
    al2 = params["al"].reshape(num_heads, hid_feats)      # (H, hid)
    ar2 = params["ar"].reshape(num_heads, hid_feats)

    # The PyTorch raw reshape h.reshape(H, N, hid) maps (row n, lane-block b) of the
    # (N, H*hid) tensor to head k = (n*H + b) // N.  Bake that mapping into full-size
    # per-element parameter slabs so the kernel stays lane-dense.
    g = jnp.arange(n * num_heads)                          # group id = n*H + b
    k_of_g = g // n                                        # head index per group
    al_full = al2[k_of_g].reshape(n, hd)                   # (N, HD)
    ar_full = ar2[k_of_g].reshape(n, hd)

    eye = jnp.eye(num_heads, dtype=jnp.float32)
    seg = jnp.repeat(eye, hid_feats, axis=0)               # (HD, H): sums each lane block
    expand = jnp.repeat(eye, hid_feats, axis=1)            # (H, HD): broadcasts back

    return dict(
        w1_t=params["w1_t"], b1=params["b1"].reshape(1, -1),
        w2_t=params["w2_t"], b2=params["b2"].reshape(1, -1),
        adj1=adj1.astype(jnp.bfloat16), norm1=norm1,       # 0/1 adjacency -> bf16 lossless
        adj2=adj2.astype(jnp.bfloat16), norm2=norm2,
        al_full=al_full, ar_full=ar_full, seg=seg, expand=expand,
    )


# ----------------------------- reference (pure JAX, faithful f32) -----------------------------

def reference_forward(h, params, adj1, norm1, adj2, norm2, num_heads, hid_feats):
    n = h.shape[0]
    h = h @ params["w1_t"] + params["b1"]
    h1 = norm1 * (adj1 @ (h * norm1))
    h2 = norm2 * (adj2 @ (h * norm2))
    hr = h.reshape(num_heads, n, hid_feats)                # raw C-order reshape, as in torch
    h1r = h1.reshape(num_heads, n, hid_feats)
    h2r = h2.reshape(num_heads, n, hid_feats)
    ai = jnp.einsum("knd,kdo->kno", hr, params["al"])
    aj1 = jnp.einsum("knd,kdo->kno", h1r, params["ar"])
    aj2 = jnp.einsum("knd,kdo->kno", h2r, params["ar"])
    lrelu = lambda v: jnp.where(v > 0, v, 0.2 * v)
    a1 = jnp.clip(jnp.exp(lrelu(ai + aj1)), -10.0, 10.0)
    a2 = jnp.clip(jnp.exp(lrelu(ai + aj2)), -10.0, 10.0)
    alpha1 = a1 / (a1 + a2)
    alpha2 = a2 / (a1 + a2)
    hc = alpha1 * h1r + alpha2 * h2r
    return hc.reshape(n, -1) @ params["w2_t"] + params["b2"]


# ----------------------------- main -----------------------------

if __name__ == "__main__":
    # Small shapes consistent with the module
    N = 16            # number of graph nodes
    in_feats = 16
    hid_feats = 8
    out_feats = 8
    num_heads = 8
    H8 = num_heads * hid_feats  # 64

    key = jax.random.PRNGKey(0)
    k_x, k_w1, k_b1, k_w2, k_b2, k_al, k_ar, k_a1, k_a2 = jax.random.split(key, 9)

    # Deterministic synthetic parameters (shapes from the module's __init__)
    stdv1 = 1.0 / math.sqrt(in_feats)
    stdv2 = 1.0 / math.sqrt(H8)
    params = {
        # Linear(in_feats, H8): weight (H8, in) -> pre-transposed to (in, H8)
        "w1_t": jax.random.uniform(k_w1, (in_feats, H8), jnp.float32, -stdv1, stdv1),
        "b1": jax.random.uniform(k_b1, (H8,), jnp.float32, -stdv1, stdv1),
        # fc(H8, out): weight (out, H8) -> pre-transposed to (H8, out)
        "w2_t": jax.random.uniform(k_w2, (H8, out_feats), jnp.float32, -stdv2, stdv2),
        "b2": jax.random.uniform(k_b2, (out_feats,), jnp.float32, -stdv2, stdv2),
        "al": jax.random.normal(k_al, (num_heads, hid_feats, 1), jnp.float32) * 0.5,
        "ar": jax.random.normal(k_ar, (num_heads, hid_feats, 1), jnp.float32) * 0.5,
    }

    # Two deterministic random graphs as dense adjacency (dst, src), with self loops,
    # and GCN symmetric norms: norm[v] = in_degree(v)^{-1/2}
    def make_graph(k):
        a = (jax.random.uniform(k, (N, N)) < 0.3).astype(jnp.float32)
        a = jnp.maximum(a, jnp.eye(N, dtype=jnp.float32))
        deg = jnp.sum(a, axis=1, keepdims=True)          # in-degree (row sums)
        norm = jax.lax.rsqrt(deg)
        return a, norm

    adj1, norm1 = make_graph(k_a1)
    adj2, norm2 = make_graph(k_a2)

    # Node features
    x = jax.random.normal(k_x, (N, in_feats), jnp.float32)

    prep = prepare_inputs(params, adj1, norm1, adj2, norm2, num_heads, hid_feats, N)

    fwd = jax.jit(gcn_layer_forward)
    out = fwd(x, prep)
    out = jax.block_until_ready(out)

    ref = reference_forward(x, params, adj1, norm1, adj2, norm2, num_heads, hid_feats)
    ref = jax.block_until_ready(ref)

    assert out.shape == (N, out_feats), out.shape
    # Tolerance loosened vs. the pure-f32 reference because the kernel uses bf16 MXU
    # operands for the adjacency matmuls and an approximate (EUP) reciprocal for the
    # attention-weight normalization.
    np.testing.assert_allclose(np.asarray(out), np.asarray(ref), rtol=2e-2, atol=2e-2)

    print("KERNEL_OK")
</pallas_src>

<mosaic_0001>
module attributes {stable_mosaic.version = 11 : i64} {
  func.func @_fused_gcn_kernel(%arg0: memref<16x16xf32, #tpu.memory_space<vmem>>, %arg1: memref<16x64xf32, #tpu.memory_space<vmem>>, %arg2: memref<1x64xf32, #tpu.memory_space<vmem>>, %arg3: memref<16x16xbf16, #tpu.memory_space<vmem>>, %arg4: memref<16x1xf32, #tpu.memory_space<vmem>>, %arg5: memref<16x16xbf16, #tpu.memory_space<vmem>>, %arg6: memref<16x1xf32, #tpu.memory_space<vmem>>, %arg7: memref<16x64xf32, #tpu.memory_space<vmem>>, %arg8: memref<16x64xf32, #tpu.memory_space<vmem>>, %arg9: memref<64x8xf32, #tpu.memory_space<vmem>>, %arg10: memref<8x64xf32, #tpu.memory_space<vmem>>, %arg11: memref<64x8xf32, #tpu.memory_space<vmem>>, %arg12: memref<1x8xf32, #tpu.memory_space<vmem>>, %arg13: memref<16x8xf32, #tpu.memory_space<vmem>>) attributes {dimension_semantics = [], scalar_prefetch = 0 : i64, scratch_operands = 0 : i64, tpu.core_type = #tpu.core_type<tc>} {
    %c0 = arith.constant 0 : index
    %c0_0 = arith.constant 0 : index
    %0 = vector.load %arg0[%c0, %c0_0] : memref<16x16xf32, #tpu.memory_space<vmem>>, vector<16x16xf32>
    %c0_1 = arith.constant 0 : index
    %c0_2 = arith.constant 0 : index
    %1 = vector.load %arg1[%c0_1, %c0_2] : memref<16x64xf32, #tpu.memory_space<vmem>>, vector<16x64xf32>
    %cst = arith.constant dense<0.000000e+00> : vector<16x64xf32>
    %2 = tpu.matmul %0, %1, %cst {dimension_numbers = #tpu.dot_dimension_numbers<[1], [0], [0], [1], [0, 0, 1, 1], [], []>} : vector<16x16xf32>, vector<16x64xf32>, vector<16x64xf32> -> vector<16x64xf32>
    %c0_3 = arith.constant 0 : index
    %c0_4 = arith.constant 0 : index
    %3 = vector.load %arg2[%c0_3, %c0_4] : memref<1x64xf32, #tpu.memory_space<vmem>>, vector<1x64xf32>
    %4 = vector.broadcast %3 : vector<1x64xf32> to vector<16x64xf32>
    %5 = arith.addf %2, %4 : vector<16x64xf32>
    %c0_5 = arith.constant 0 : index
    %c0_6 = arith.constant 0 : index
    %6 = vector.load %arg4[%c0_5, %c0_6] : memref<16x1xf32, #tpu.memory_space<vmem>>, vector<16x1xf32>
    %c0_7 = arith.constant 0 : index
    %c0_8 = arith.constant 0 : index
    %7 = vector.load %arg6[%c0_7, %c0_8] : memref<16x1xf32, #tpu.memory_space<vmem>>, vector<16x1xf32>
    %8 = vector.broadcast %6 : vector<16x1xf32> to vector<16x64xf32>
    %9 = arith.mulf %5, %8 : vector<16x64xf32>
    %10 = arith.truncf %9 : vector<16x64xf32> to vector<16x64xbf16>
    %11 = vector.broadcast %7 : vector<16x1xf32> to vector<16x64xf32>
    %12 = arith.mulf %5, %11 : vector<16x64xf32>
    %13 = arith.truncf %12 : vector<16x64xf32> to vector<16x64xbf16>
    %c0_9 = arith.constant 0 : index
    %c0_10 = arith.constant 0 : index
    %14 = vector.load %arg3[%c0_9, %c0_10] : memref<16x16xbf16, #tpu.memory_space<vmem>>, vector<16x16xbf16>
    %cst_11 = arith.constant dense<0.000000e+00> : vector<16x64xf32>
    %15 = tpu.matmul %14, %10, %cst_11 {dimension_numbers = #tpu.dot_dimension_numbers<[1], [0], [0], [1], [0, 0, 1, 1], [], []>} : vector<16x16xbf16>, vector<16x64xbf16>, vector<16x64xf32> -> vector<16x64xf32>
    %16 = vector.broadcast %6 : vector<16x1xf32> to vector<16x64xf32>
    %17 = arith.mulf %16, %15 : vector<16x64xf32>
    %c0_12 = arith.constant 0 : index
    %c0_13 = arith.constant 0 : index
    %18 = vector.load %arg5[%c0_12, %c0_13] : memref<16x16xbf16, #tpu.memory_space<vmem>>, vector<16x16xbf16>
    %cst_14 = arith.constant dense<0.000000e+00> : vector<16x64xf32>
    %19 = tpu.matmul %18, %13, %cst_14 {dimension_numbers = #tpu.dot_dimension_numbers<[1], [0], [0], [1], [0, 0, 1, 1], [], []>} : vector<16x16xbf16>, vector<16x64xbf16>, vector<16x64xf32> -> vector<16x64xf32>
    %20 = vector.broadcast %7 : vector<16x1xf32> to vector<16x64xf32>
    %21 = arith.mulf %20, %19 : vector<16x64xf32>
    %c0_15 = arith.constant 0 : index
    %c0_16 = arith.constant 0 : index
    %22 = vector.load %arg9[%c0_15, %c0_16] : memref<64x8xf32, #tpu.memory_space<vmem>>, vector<64x8xf32>
    %c0_17 = arith.constant 0 : index
    %c0_18 = arith.constant 0 : index
    %23 = vector.load %arg7[%c0_17, %c0_18] : memref<16x64xf32, #tpu.memory_space<vmem>>, vector<16x64xf32>
    %24 = arith.mulf %5, %23 : vector<16x64xf32>
    %cst_19 = arith.constant dense<0.000000e+00> : vector<16x8xf32>
    %25 = tpu.matmul %24, %22, %cst_19 {dimension_numbers = #tpu.dot_dimension_numbers<[1], [0], [0], [1], [0, 0, 1, 1], [], []>} : vector<16x64xf32>, vector<64x8xf32>, vector<16x8xf32> -> vector<16x8xf32>
    %c0_20 = arith.constant 0 : index
    %c0_21 = arith.constant 0 : index
    %26 = vector.load %arg8[%c0_20, %c0_21] : memref<16x64xf32, #tpu.memory_space<vmem>>, vector<16x64xf32>
    %27 = arith.mulf %17, %26 : vector<16x64xf32>
    %cst_22 = arith.constant dense<0.000000e+00> : vector<16x8xf32>
    %28 = tpu.matmul %27, %22, %cst_22 {dimension_numbers = #tpu.dot_dimension_numbers<[1], [0], [0], [1], [0, 0, 1, 1], [], []>} : vector<16x64xf32>, vector<64x8xf32>, vector<16x8xf32> -> vector<16x8xf32>
    %c0_23 = arith.constant 0 : index
    %c0_24 = arith.constant 0 : index
    %29 = vector.load %arg8[%c0_23, %c0_24] : memref<16x64xf32, #tpu.memory_space<vmem>>, vector<16x64xf32>
    %30 = arith.mulf %21, %29 : vector<16x64xf32>
    %cst_25 = arith.constant dense<0.000000e+00> : vector<16x8xf32>
    %31 = tpu.matmul %30, %22, %cst_25 {dimension_numbers = #tpu.dot_dimension_numbers<[1], [0], [0], [1], [0, 0, 1, 1], [], []>} : vector<16x64xf32>, vector<64x8xf32>, vector<16x8xf32> -> vector<16x8xf32>
    %32 = arith.addf %25, %28 : vector<16x8xf32>
    %cst_26 = arith.constant 0.000000e+00 : f32
    %33 = vector.broadcast %cst_26 : f32 to vector<16x8xf32>
    %34 = arith.cmpf ogt, %32, %33 : vector<16x8xf32>
    %cst_27 = arith.constant 2.000000e-01 : f32
    %35 = vector.broadcast %cst_27 : f32 to vector<16x8xf32>
    %36 = arith.mulf %35, %32 : vector<16x8xf32>
    %37 = arith.select %34, %32, %36 : vector<16x8xi1>, vector<16x8xf32>
    %38 = math.exp %37 : vector<16x8xf32>
    %cst_28 = arith.constant -1.000000e+01 : f32
    %cst_29 = arith.constant 1.000000e+01 : f32
    %39 = vector.broadcast %cst_28 : f32 to vector<16x8xf32>
    %40 = arith.maximumf %39, %38 : vector<16x8xf32>
    %41 = vector.broadcast %cst_29 : f32 to vector<16x8xf32>
    %42 = arith.minimumf %41, %40 : vector<16x8xf32>
    %43 = arith.addf %25, %31 : vector<16x8xf32>
    %cst_30 = arith.constant 0.000000e+00 : f32
    %44 = vector.broadcast %cst_30 : f32 to vector<16x8xf32>
    %45 = arith.cmpf ogt, %43, %44 : vector<16x8xf32>
    %cst_31 = arith.constant 2.000000e-01 : f32
    %46 = vector.broadcast %cst_31 : f32 to vector<16x8xf32>
    %47 = arith.mulf %46, %43 : vector<16x8xf32>
    %48 = arith.select %45, %43, %47 : vector<16x8xi1>, vector<16x8xf32>
    %49 = math.exp %48 : vector<16x8xf32>
    %cst_32 = arith.constant -1.000000e+01 : f32
    %cst_33 = arith.constant 1.000000e+01 : f32
    %50 = vector.broadcast %cst_32 : f32 to vector<16x8xf32>
    %51 = arith.maximumf %50, %49 : vector<16x8xf32>
    %52 = vector.broadcast %cst_33 : f32 to vector<16x8xf32>
    %53 = arith.minimumf %52, %51 : vector<16x8xf32>
    %54 = arith.addf %42, %53 : vector<16x8xf32>
    %55 = tpu.reciprocal %54 {approx = true} : vector<16x8xf32> -> vector<16x8xf32>
    %56 = arith.mulf %42, %55 : vector<16x8xf32>
    %c0_34 = arith.constant 0 : index
    %c0_35 = arith.constant 0 : index
    %57 = vector.load %arg10[%c0_34, %c0_35] : memref<8x64xf32, #tpu.memory_space<vmem>>, vector<8x64xf32>
    %cst_36 = arith.constant dense<0.000000e+00> : vector<16x64xf32>
    %58 = tpu.matmul %56, %57, %cst_36 {dimension_numbers = #tpu.dot_dimension_numbers<[1], [0], [0], [1], [0, 0, 1, 1], [], []>} : vector<16x8xf32>, vector<8x64xf32>, vector<16x64xf32> -> vector<16x64xf32>
    %59 = arith.subf %17, %21 : vector<16x64xf32>
    %60 = arith.mulf %58, %59 : vector<16x64xf32>
    %61 = arith.addf %21, %60 : vector<16x64xf32>
    %c0_37 = arith.constant 0 : index
    %c0_38 = arith.constant 0 : index
    %62 = vector.load %arg11[%c0_37, %c0_38] : memref<64x8xf32, #tpu.memory_space<vmem>>, vector<64x8xf32>
    %cst_39 = arith.constant dense<0.000000e+00> : vector<16x8xf32>
    %63 = tpu.matmul %61, %62, %cst_39 {dimension_numbers = #tpu.dot_dimension_numbers<[1], [0], [0], [1], [0, 0, 1, 1], [], []>} : vector<16x64xf32>, vector<64x8xf32>, vector<16x8xf32> -> vector<16x8xf32>
    %c0_40 = arith.constant 0 : index
    %c0_41 = arith.constant 0 : index
    %64 = vector.load %arg12[%c0_40, %c0_41] : memref<1x8xf32, #tpu.memory_space<vmem>>, vector<1x8xf32>
    %65 = vector.broadcast %64 : vector<1x8xf32> to vector<16x8xf32>
    %66 = arith.addf %63, %65 : vector<16x8xf32>
    %c0_42 = arith.constant 0 : index
    %c0_43 = arith.constant 0 : index
    %67 = vector.load %arg13[%c0_42, %c0_43] : memref<16x8xf32, #tpu.memory_space<vmem>>, vector<16x8xf32>
    tpu.vector_store %arg13[%c0_42, %c0_43], %66 {strides = array<i32>} : memref<16x8xf32, #tpu.memory_space<vmem>>, vector<16x8xf32>,
    return
  }
}

</mosaic_0001>

<bundles_post_ra>
// kernel: gcn_layer_forward.1
= control target key start
LH: loop header
LB: loop body
LE: loop exit
PB: predicated region body
PF: predicated region fallthrough
CT: control target
= control target key end

     0   :  { %vm56_vm0 = vcmask 130048   ;;  %v1025_v3 = vmov 0   ;;  %v1026_v10 = vmov 0.0   ;;  %vm1027_vm1 = vmmov 0   ;;  %s1253_s1 = inlined_call_operand.vmem [shape: f32[16,64], index: 1, kind: input, shape index: {}]   ;;  %s1254_s0 = inlined_call_operand.vmem [shape: f32[16,16], index: 0, kind: input, shape index: {}]   ;;  %s1255_s4 = inlined_call_operand.vmem [shape: f32[16,1], index: 4, kind: input, shape index: {}]   ;;  %s1256_s6 = inlined_call_operand.vmem [shape: f32[16,1], index: 6, kind: input, shape index: {}]   ;;  %s1257_s3 = inlined_call_operand.vmem [shape: bf16[16,16], index: 3, kind: input, shape index: {}]   ;;  %s1258_s5 = inlined_call_operand.vmem [shape: bf16[16,16], index: 5, kind: input, shape index: {}]   ;;  %s1259_s2 = inlined_call_operand.vmem [shape: f32[1,64], index: 2, kind: input, shape index: {}]   ;;  %s1260_s9 = inlined_call_operand.vmem [shape: f32[64,8], index: 9, kind: input, shape index: {}]   ;;  %s1261_s7 = inlined_call_operand.vmem [shape: f32[16,64], index: 7, kind: input, shape index: {}]   ;;  %s1262_s8 = inlined_call_operand.vmem [shape: f32[16,64], index: 8, kind: input, shape index: {}]   ;;  %s1263_s10 = inlined_call_operand.vmem [shape: f32[8,64], index: 10, kind: input, shape index: {}]   ;;  %s1264_s11 = inlined_call_operand.vmem [shape: f32[64,8], index: 11, kind: input, shape index: {}]   ;;  %s1265_s12 = inlined_call_operand.vmem [shape: f32[1,8], index: 12, kind: input, shape index: {}]   ;;  %s1266_s13 = inlined_call_operand.vmem [shape: f32[16,8], index: 13, kind: output, shape index: {}]  }
   0x1   :  { %v47_v0 = vld [vmem:[%s1253_s1] sm:$0xff]  ;;  %v48_v1 = vld [vmem:[%s1253_s1 + $0x8] sm:$0xff]  ;;  %1009 = vset.pattern.permute.xlu0 %v1025_v3  ;;  %1010 = vset.pattern.permute.xlu1 %v1025_v3  ;;  %v276_v29 = vld [vmem:[%s1260_s9 + $0x10] sm:$0xff]  ;;  %vm286_vm2 = vcmask 523264   ;;  %vm575_vm7 = vcmask 64512  }
   0x2   :  { %v45_v2 = vld [vmem:[%s1254_s0] sm:$0xff]  ;;  %v938_v4 = vpack.c.bf16 %v48_v1, %v47_v0  ;;  %v139_v7 = vld [vmem:[%s1255_s4 + $0x8] sm:$0xff]  ;;  %851 = vmatprep.subr.bf16.mxu0 %v1026_v10  ;;  %853 = vmatprep.mubr.msk.bf16.mxu0 %vm1027_vm1, %v1026_v10  ;;  %v277_v30 = vld [vmem:[%s1260_s9 + $0x18] sm:$0xff] }
   0x3   :  { %842 = vmatprep.mubr.msk.f32.mxu1 %vm56_vm0, %v45_v2  ;;  %v138_v5 = vld [vmem:[%s1255_s4] sm:$0xff]  ;;  %v141_v8 = vld [vmem:[%s1256_s6 + $0x8] sm:$0xff]  ;;  %v946_v34 = vpack.c.bf16 %v277_v30, %v276_v29  ;;  %v280_v39 = vld [vmem:[%s1260_s9 + $0x30] sm:$0xff] }
   0x4   :  { %v140_v6 = vld [vmem:[%s1256_s6] sm:$0xff]  ;;  %144 = vperm.xlu0 %1009, %v138_v5   ;;  %939 = vmatprep.subr.bf16.mxu1 %v938_v4  ;;  %v46_v9 = vld [vmem:[%s1254_s0 + $0x8] sm:$0xff]  ;;  %v281_v40 = vld [vmem:[%s1260_s9 + $0x38] sm:$0xff] }
   0x5   :  { %157 = vperm.xlu1 %1010, %v140_v6   ;;  %941 = vmatpush3.bf16.msra.mxu1 %v938_v4  ;;  %v765_v13 = vld [vmem:[%s1259_s2] ss:$0 sm:$0xff]  ;;  %v275_v21 = vld [vmem:[%s1260_s9 + $0x8] sm:$0xff]  ;;  %v954_v41 = vpack.c.bf16 %v281_v40, %v280_v39 }
   0x6   :  { %845 = vmatprep.subr.bf16.mxu1 %v1026_v10  ;;  %v274_v20 = vld [vmem:[%s1260_s9] sm:$0xff]  ;;  %v279_v37 = vld [vmem:[%s1260_s9 + $0x28] sm:$0xff] }
   0x7   :  { %v942_v26 = vpack.c.bf16 %v275_v21, %v274_v20  ;;  %v282_v31 = vld [vmem:[%s1261_s7] sm:$0xff]  ;;  %v283_v42 = vld [vmem:[%s1261_s7 + $0x8] sm:$0xff] }
   0x8   :  { %149 = vperm.xlu0 %1009, %v139_v7   ;;  %843 = vmatmul.mubr.msk.f32.vlgmr.msra.gmra.mrb[0].mxu1 %vm56_vm0, %v46_v9  ;;  %v1011_v32 = vld [vmem:[%s1257_s3] sm:$0xff]   ;;  %v369_v52 = vld [vmem:[%s1262_s8 + $0x8] sm:$0xff] }
   0x9   :  { %162 = vperm.xlu1 %1010, %v141_v8   ;;  %847 = vmatprep.mubr.msk.bf16.mxu1 %vm1027_vm1, %v1026_v10  ;;  %v1012_v33 = vld [vmem:[%s1258_s5] sm:$0xff]   ;;  %v664_v2 = vld [vmem:[%s1264_s11 + $0x8] sm:$0xff] }
   0xa   :  { %v278_v36 = vld [vmem:[%s1260_s9 + $0x20] sm:$0xff] }
   0xb   :  { %v950_v38 = vpack.c.bf16 %v279_v37, %v278_v36  ;;  %v368_v45 = vld [vmem:[%s1262_s8] sm:$0xff]  ;;  %v665_v36 = vld [vmem:[%s1264_s11 + $0x10] sm:$0xff]  ;;  %v666_v37 = vld [vmem:[%s1264_s11 + $0x18] sm:$0xff] }
   0xc   :  { %v574_v0 = vld [vmem:[%s1263_s10] sm:$0xff]  ;;  %v994_v40 = vpack.c.bf16 %v666_v37, %v665_v36 }
   0xd   :  { %v663_v1 = vld [vmem:[%s1264_s11] sm:$0xff] }
   0xe   :  { %v990_v3 = vpack.c.bf16 %v664_v2, %v663_v1 }
  0x83   :  { %v1124_v11 = vpop.permute.xlu0 %144 }
  0x84   :  { %v1126_v12 = vpop.permute.xlu1 %157 }
  0x87   :  { %v1131_v17 = vpop.permute.xlu0 %149 }
  0x88   :  { %v1133_v18 = vpop.permute.xlu1 %162 }
  0xdb   :  { %v844_v14 = vpop.f32.mrb[0].mxu1 }
  0xdc   :  { %v135_v15 = vadd.f32 %v844_v14, %v765_v13  ;;  %v129_v16 = vpop.f32.mrb[1].mxu1 }
  0xdd   :  { %v130_v19 = vadd.f32 %v765_v13, %v129_v16 }
  0xde   :  { %v153_v22 = vmul.f32 %v1131_v17, %v135_v15  ;;  %v166_v23 = vmul.f32 %v1133_v18, %v135_v15  ;;  %v285_v43 = vmul.f32 %v283_v42, %v135_v15  ;;  %v668_v42 = vld [vmem:[%s1264_s11 + $0x28] sm:$0xff] }
  0xdf   :  { %v152_v24 = vmul.f32 %v1124_v11, %v130_v19  ;;  %v165_v25 = vmul.f32 %v1126_v12, %v130_v19  ;;  %v284_v35 = vmul.f32 %v282_v31, %v130_v19 }
  0xe1   :  { %v154_v27 = vpack.c.bf16 %v153_v22, %v152_v24  ;;  %v167_v28 = vpack.c.bf16 %v166_v23, %v165_v25 }
  0xe3   :  { %846 = vmatpush3.bf16.msra.mxu1 %v154_v27  ;;  %852 = vmatpush3.bf16.msra.mxu0 %v167_v28 }
  0xe4   :  { %943 = vmatprep.subr.bf16.mxu1 %v942_v26  ;;  %959 = vmatprep.subr.bf16.mxu0 %v942_v26 }
  0xe6   :  { %848 = vmatmul.mubr.msk.bf16.vlgmr.msra.gmra.mrb[4].mxu1 %vm56_vm0, %v1011_v32  ;;  %854 = vmatmul.mubr.msk.bf16.vlgmr.msra.gmra.mrb[0].mxu0 %vm56_vm0, %v1012_v33 }
  0xe7   :  { %945 = vmatpush3.bf16.msra.mxu1 %v942_v26  ;;  %873 = vmatprep.mubr.msk.f32.mxu1 %vm286_vm2, %v284_v35 }
  0xe8   :  { %947 = vmatprep.subr.bf16.mxu1 %v946_v34  ;;  %961 = vmatpush3.bf16.msra.mxu0 %v942_v26 }
  0xe9   :  { %963 = vmatprep.subr.bf16.mxu0 %v946_v34 }
  0xeb   :  { %949 = vmatpush3.bf16.msra.mxu1 %v946_v34 }
  0xec   :  { %951 = vmatprep.subr.bf16.mxu1 %v950_v38  ;;  %965 = vmatpush3.bf16.msra.mxu0 %v946_v34 }
  0xed   :  { %967 = vmatprep.subr.bf16.mxu0 %v950_v38 }
  0xef   :  { %953 = vmatpush3.bf16.msra.mxu1 %v950_v38 }
  0xf0   :  { %955 = vmatprep.subr.bf16.mxu1 %v954_v41  ;;  %969 = vmatpush3.bf16.msra.mxu0 %v950_v38 }
  0xf1   :  { %971 = vmatprep.subr.bf16.mxu0 %v954_v41 }
  0xf3   :  { %957 = vmatpush3.bf16.msra.mxu1 %v954_v41 }
  0xf4   :  { %975 = vmatprep.subr.bf16.mxu1 %v942_v26  ;;  %973 = vmatpush3.bf16.msra.mxu0 %v954_v41 }
  0xf5   :  { %914 = vmatprep.subr.mxu0 %v574_v0 }
  0xf6   :  { %874 = vmatmul.mubr.msk.f32.vlgmr.msra.gmra.mrb[2].mxu1 %vm286_vm2, %v285_v43 }
  0xf7   :  { %977 = vmatpush3.bf16.msra.mxu1 %v942_v26 }
  0xf8   :  { %979 = vmatprep.subr.bf16.mxu1 %v946_v34 }
  0xfb   :  { %981 = vmatpush3.bf16.msra.mxu1 %v946_v34 }
  0xfc   :  { %983 = vmatprep.subr.bf16.mxu1 %v950_v38 }
  0xff   :  { %985 = vmatpush3.bf16.msra.mxu1 %v950_v38 }
 0x100   :  { %987 = vmatprep.subr.bf16.mxu1 %v954_v41 }
 0x103   :  { %989 = vmatpush3.bf16.msra.mxu1 %v954_v41  ;;  %v667_v41 = vld [vmem:[%s1264_s11 + $0x20] sm:$0xff] }
 0x104   :  { %v998_v43 = vpack.c.bf16 %v668_v42, %v667_v41 }
 0x1b9   :  { %v212_v44 = vpop.f32.mrb[4].mxu1  ;;  %v265_v46 = vpop.f32.mrb[0].mxu0 }
 0x1ba   :  { %v1183_v47 = vmul.f32 %v212_v44, %v1124_v11  ;;  %v1186_v48 = vmul.f32 %v265_v46, %v1126_v12  ;;  %v849_v49 = vpop.f32.mrb[5].mxu1  ;;  %v855_v50 = vpop.f32.mrb[1].mxu0  ;;  %v669_v44 = vld [vmem:[%s1264_s11 + $0x30] sm:$0xff] }
 0x1bb   :  { %v215_v51 = vpop.f32.mrb[6].mxu1  ;;  %v268_v53 = vpop.f32.mrb[2].mxu0 }
 0x1bc   :  { %v370_v54 = vmul.f32 %v368_v45, %v1183_v47  ;;  %v453_v55 = vmul.f32 %v368_v45, %v1186_v48  ;;  %v1194_v56 = vmul.f32 %v215_v51, %v1131_v17  ;;  %v1197_v57 = vmul.f32 %v268_v53, %v1133_v18  ;;  %v850_v58 = vpop.f32.mrb[7].mxu1  ;;  %v856_v59 = vpop.f32.mrb[3].mxu0  ;;  %v670_v45 = vld [vmem:[%s1264_s11 + $0x38] sm:$0xff] }
 0x1bd   :  { %v1002_v46 = vpack.c.bf16 %v670_v45, %v669_v44  ;;  %v657_v51 = vsub.f32 %v1183_v47, %v1186_v48  ;;  %v784_v59 = vld [vmem:[%s1265_s12] ss:$0 sm:$0xff] }
 0x1be   :  { %v371_v60 = vmul.f32 %v369_v52, %v1194_v56  ;;  %v454_v61 = vmul.f32 %v369_v52, %v1197_v57  ;;  %892 = vmatprep.mubr.msk.f32.mxu0 %vm286_vm2, %v370_v54  ;;  %911 = vmatprep.mubr.msk.f32.mxu1 %vm286_vm2, %v453_v55  ;;  %v658_v49 = vsub.f32 %v1194_v56, %v1197_v57 }
 0x1c0   :  { %893 = vmatmul.mubr.msk.f32.vlgmr.msra.gmra.mrb[4].mxu0 %vm286_vm2, %v371_v60  ;;  %912 = vmatmul.mubr.msk.f32.vlgmr.msra.gmra.mrb[8].mxu1 %vm286_vm2, %v454_v61 }
 0x1c1   :  { %915 = vmatpush3.msra.mxu0 %v574_v0 }
 0x1c2   :  { %991 = vmatprep.subr.bf16.mxu0 %v990_v3 }
 0x1c9   :  { %v875_v62 = vpop.f32.mrb[2].mxu1 }
 0x1ca   :  { %v359_v63 = vpop.f32.mrb[3].mxu1 }
 0x293   :  { %v894_v4 = vpop.f32.mrb[4].mxu0  ;;  %v913_v5 = vpop.f32.mrb[8].mxu1 }
 0x294   :  { %v537_v6 = vadd.f32 %v894_v4, %v875_v62  ;;  %v553_v7 = vadd.f32 %v913_v5, %v875_v62  ;;  %v444_v8 = vpop.f32.mrb[5].mxu0  ;;  %v527_v9 = vpop.f32.mrb[9].mxu1 }
 0x295   :  { %v536_v10 = vadd.f32 %v444_v8, %v359_v63  ;;  %v552_v11 = vadd.f32 %v527_v9, %v359_v63 }
 0x296   :  { %vm539_vm3 = vcmp.gt.f32.partialorder %v537_v6, 0.0  ;;  %v541_v12 = vmul.f32 0.2, %v537_v6  ;;  %vm555_vm4 = vcmp.gt.f32.partialorder %v553_v7, 0.0  ;;  %v557_v13 = vmul.f32 0.2, %v553_v7 }
 0x297   :  { %vm538_vm5 = vcmp.gt.f32.partialorder %v536_v10, 0.0  ;;  %v540_v14 = vmul.f32 0.2, %v536_v10  ;;  %vm554_vm6 = vcmp.gt.f32.partialorder %v552_v11, 0.0  ;;  %v556_v15 = vmul.f32 0.2, %v552_v11 }
 0x298   :  { %v543_v16 = vsel %vm539_vm3, %v537_v6, %v541_v12  ;;  %v559_v17 = vsel %vm555_vm4, %v553_v7, %v557_v13 }
 0x299   :  { %v546_v18 = vmul.f32 1.442695, %v543_v16  ;;  %v562_v19 = vmul.f32 1.442695, %v559_v17  ;;  %v542_v20 = vsel %vm538_vm5, %v536_v10, %v540_v14  ;;  %v558_v21 = vsel %vm554_vm6, %v552_v11, %v556_v15 }
 0x29a   :  { %v544_v22 = vmul.f32 1.442695, %v542_v20  ;;  %v560_v23 = vmul.f32 1.442695, %v558_v21 }
 0x29b   :  { %1013 = vpow2.f32 %v546_v18 }
 0x29c   :  { %1015 = vpow2.f32 %v562_v19 }
 0x29d   :  { %1017 = vpow2.f32 %v544_v22 }
 0x29e   :  { %1019 = vpow2.f32 %v560_v23 }
 0x2a5   :  { %v1014_v24 = vpop.eup %1013 }
 0x2a6   :  { %v1016_v25 = vpop.eup %1015  ;;  %v779_v26 = vclamps-f32 %v1014_v24, 10.0 }
 0x2a7   :  { %v1018_v27 = vpop.eup %1017  ;;  %v781_v28 = vclamps-f32 %v1016_v25, 10.0 }
 0x2a8   :  { %v1020_v29 = vpop.eup %1019  ;;  %v778_v30 = vclamps-f32 %v1018_v27, 10.0 }
 0x2a9   :  { %v569_v31 = vadd.f32 %v781_v28, %v779_v26  ;;  %v780_v32 = vclamps-f32 %v1020_v29, 10.0 }
 0x2ab   :  { %1021 = vrcp.f32 %v569_v31  ;;  %v568_v33 = vadd.f32 %v780_v32, %v778_v30 }
 0x2ad   :  { %1023 = vrcp.f32 %v568_v33 }
 0x2b5   :  { %v1022_v34 = vpop.eup %1021 }
 0x2b6   :  { %v573_v35 = vmul.f32 %v1022_v34, %v779_v26 }
 0x2b7   :  { %v1024_v38 = vpop.eup %1023 }
 0x2b8   :  { %v572_v39 = vmul.f32 %v1024_v38, %v778_v30 }
 0x2ba   :  { %916 = vmatprep.mubr.msk.f32.mxu0 %vm575_vm7, %v572_v39 }
 0x2bb   :  { %917 = vmatmul.mubr.msk.f32.vlgmr.msra.gmra.mrb[6].mxu0 %vm575_vm7, %v573_v35 }
 0x2bc   :  { %993 = vmatpush3.bf16.msra.mxu0 %v990_v3 }
 0x2bd   :  { %995 = vmatprep.subr.bf16.mxu0 %v994_v40 }
 0x2c0   :  { %997 = vmatpush3.bf16.msra.mxu0 %v994_v40 }
 0x2c1   :  { %999 = vmatprep.subr.bf16.mxu0 %v998_v43 }
 0x2c4   :  { %1001 = vmatpush3.bf16.msra.mxu0 %v998_v43 }
 0x2c5   :  { %1003 = vmatprep.subr.bf16.mxu0 %v1002_v46 }
 0x2c8   :  { %1005 = vmatpush3.bf16.msra.mxu0 %v1002_v46 }
 0x38e   :  { %v918_v50 = vpop.f32.mrb[6].mxu0 }
 0x38f   :  { %v660_v52 = vmul.f32 %v918_v50, %v658_v49  ;;  %v648_v53 = vpop.f32.mrb[7].mxu0 }
 0x390   :  { %v659_v54 = vmul.f32 %v657_v51, %v648_v53 }
 0x391   :  { %v662_v58 = vadd.f32 %v660_v52, %v1197_v57 }
 0x392   :  { %v661_v55 = vadd.f32 %v659_v54, %v1186_v48 }
 0x394   :  { %935 = vmatprep.mubr.msk.f32.mxu0 %vm286_vm2, %v661_v55 }
 0x395   :  { %936 = vmatmul.mubr.msk.f32.vlgmr.msra.gmra.mrb[8].mxu0 %vm286_vm2, %v662_v58 }
 0x468   :  { %v937_v56 = vpop.f32.mrb[8].mxu0 }
 0x469   :  { %v756_v60 = vadd.f32 %v937_v56, %v784_v59  ;;  %v750_v61 = vpop.f32.mrb[9].mxu0 }
 0x46a   :  { %v751_v62 = vadd.f32 %v784_v59, %v750_v61 }
 0x46b   :  { %760 = vst.msk [vmem:[%s1266_s13 + $0x8] sm:$0xff] %vm575_vm7, %v756_v60 }
 0x46c   :  { %759 = vst.msk [vmem:[%s1266_s13] sm:$0xff] %vm575_vm7, %v751_v62 }

</bundles_post_ra>
